<compile_context>
chip_gen: v7x
topology: tpu7x:2x2x1
jax: 0.10.0
libtpu: 0.0.40
codegen_flags: <defaults>
</compile_context>

<pallas_src>
import functools

import jax
import jax.numpy as jnp
from jax.experimental import pallas as pl
from jax.experimental.pallas import tpu as pltpu


def _ce_partial_kernel(x_ref, y_ref, psum_ref, *, n_total, mask_rows):
    """Per-block sum of per-sample cross-entropy (last block masked if padded).

    x_ref:    (TN, C) logits block in VMEM (any float dtype; upcast to f32).
    y_ref:    (TN, 1) int32 labels block in VMEM.
    psum_ref: (1, 1)  f32 partial-sum output block in SMEM.
    """
    x = x_ref[...].astype(jnp.float32)            # (TN, C)
    labels = y_ref[...]                           # (TN, 1) int32
    tn, c = x.shape

    # Target logit per row: (1, C) iota broadcast against (TN, 1) labels,
    # single select + lane reduction (no one-hot multiply, no int->f32 cast).
    col_ids = jax.lax.broadcasted_iota(jnp.int32, (1, c), 1)
    target_logit = jnp.sum(jnp.where(col_ids == labels, x, 0.0),
                           axis=1, keepdims=True)                   # (TN, 1)

    # Numerically stable log-sum-exp along the class (lane) axis.
    m = jnp.max(x, axis=1, keepdims=True)                           # (TN, 1)
    lse = m + jnp.log(jnp.sum(jnp.exp(x - m), axis=1, keepdims=True))

    per_sample = lse - target_logit                                 # (TN, 1)

    psum_ref[0, 0] = jnp.sum(per_sample)

    if mask_rows:
        # Only the last grid step can contain padded (undefined) rows; redo
        # its reduction with the out-of-range rows zeroed.  Statically
        # removed when N % TN == 0.
        i = pl.program_id(0)

        @pl.when(i == pl.num_programs(0) - 1)
        def _():
            row_ids = jax.lax.broadcasted_iota(jnp.int32, (tn, 1), 0) + i * tn
            psum_ref[0, 0] = jnp.sum(
                jnp.where(row_ids < n_total, per_sample, 0.0))


def _generation_budgets():
    """(target block bytes, scoped VMEM limit) from the chip's VMEM size."""
    vmem_bytes = None
    try:
        vmem_bytes = int(pltpu.get_tpu_info().vmem_capacity_bytes)
    except Exception:
        vmem_bytes = None
    if vmem_bytes is not None and vmem_bytes >= 96 * 1024 * 1024:
        # v5e / v6e: 128 MiB physical VMEM.  Big blocks amortize the
        # ~0.35 us per-grid-step cost; raise the scoped limit past the
        # 16/32 MiB defaults (2 pipeline bufs x 12 MiB + labels << 64 MiB).
        return 12 * 1024 * 1024, 64 * 1024 * 1024
    # v7x (64 MiB per TensorCore) or unknown chip: stay within a 32 MiB
    # scope (2 x 8 MiB blocks + labels leaves comfortable headroom).
    return 8 * 1024 * 1024, 32 * 1024 * 1024


def _sublane_align(dtype):
    itemsize = jnp.dtype(dtype).itemsize
    if itemsize >= 4:
        return 8
    if itemsize == 2:
        return 16      # bf16 / fp16 packed sublane tile
    return 32          # int8 / fp8


def _choose_rows(n, c, dtype, target_block_bytes):
    """Rows per logits block: sublane-aligned, sized purely by byte budget."""
    itemsize = jnp.dtype(dtype).itemsize
    align = _sublane_align(dtype)
    rows = target_block_bytes // max(1, c * itemsize)
    rows = max(align, (rows // align) * align)
    rows = min(rows, 8192)
    if rows < n:
        return rows
    # Whole batch fits in one block.  If N allows, still split into >= 2
    # aligned blocks so both TensorCores on v7x get work along the parallel
    # grid axis (one extra ~0.35 us grid step is noise elsewhere).
    if n >= 2 * align:
        half = -(-n // 2)                       # ceil(n / 2)
        rows = -(-half // align) * align        # round up to alignment
        if rows < n:
            return rows
    return n


def cross_entropy_loss(x, y, *, rows_per_block=None):
    """Mean cross-entropy of logits x (N, C) against labels y (N,) or (N, 1).

    Accepts f32 or bf16 logits (bf16 halves HBM traffic; the kernel upcasts
    to f32 internally for the log-sum-exp).
    """
    n, c = x.shape
    y = y.reshape(n, 1).astype(jnp.int32)

    target_block_bytes, vmem_limit = _generation_budgets()
    align = _sublane_align(x.dtype)

    if rows_per_block is None:
        tn = _choose_rows(n, c, x.dtype, target_block_bytes)
    else:
        tn = min(int(rows_per_block), n)
        if tn < n:
            tn = max(align, (tn // align) * align)   # keep tiling legal

    num_blocks = pl.cdiv(n, tn)
    mask_rows = (n % tn) != 0

    kernel = functools.partial(_ce_partial_kernel,
                               n_total=n, mask_rows=mask_rows)

    partial_sums = pl.pallas_call(
        kernel,
        out_shape=jax.ShapeDtypeStruct((num_blocks, 1), jnp.float32),
        grid=(num_blocks,),
        in_specs=[
            pl.BlockSpec((tn, c), lambda i: (i, 0)),   # logits: C on lanes
            pl.BlockSpec((tn, 1), lambda i: (i, 0)),   # labels column
        ],
        out_specs=pl.BlockSpec((1, 1), lambda i: (i, 0),
                               memory_space=pltpu.MemorySpace.SMEM),
        compiler_params=pltpu.CompilerParams(
            dimension_semantics=("parallel",),          # megacore-shardable
            vmem_limit_bytes=vmem_limit,
        ),
    )(x, y)

    # Tiny final reduction (num_blocks scalars) + mean divide in the wrapper.
    return jnp.sum(partial_sums) / jnp.float32(n)


def loss_forward(x, y):
    """Mirrors Loss.forward: y.squeeze(1) then CE twice (identical values)."""
    loss = cross_entropy_loss(x, y)
    return loss, loss


def _ref_ce(x, y):
    logp = jax.nn.log_softmax(x.astype(jnp.float32), axis=-1)
    return -jnp.mean(jnp.take_along_axis(logp, y.reshape(-1, 1), axis=-1))


if __name__ == "__main__":
    key = jax.random.PRNGKey(0)
    kx, ky = jax.random.split(key)

    # Small shapes consistent with the module: (N, C) logits, (N, 1) labels.
    N, C = 8, 32
    x = jax.random.normal(kx, (N, C), dtype=jnp.float32)
    y = jax.random.randint(ky, (N, 1), 0, C, dtype=jnp.int32)

    l1, l2 = loss_forward(x, y)
    l1 = jax.block_until_ready(l1)
    l2 = jax.block_until_ready(l2)

    ref = _ref_ce(x, y)
    assert jnp.allclose(l1, ref, atol=1e-5, rtol=1e-5), (l1, ref)
    assert jnp.allclose(l2, ref, atol=1e-5, rtol=1e-5), (l2, ref)

    # Multi-block + padded-last-block masking path (N not a tile multiple).
    k2x, k2y = jax.random.split(jax.random.PRNGKey(1))
    N2, C2 = 20, 32
    x2 = jax.random.normal(k2x, (N2, C2), dtype=jnp.float32)
    y2 = jax.random.randint(k2y, (N2, 1), 0, C2, dtype=jnp.int32)
    l3 = jax.block_until_ready(cross_entropy_loss(x2, y2, rows_per_block=8))
    ref2 = _ref_ce(x2, y2)
    assert jnp.allclose(l3, ref2, atol=1e-5, rtol=1e-5), (l3, ref2)

    # bf16 logits path (halved HBM traffic, 16-row alignment, >=2 blocks).
    k3x, k3y = jax.random.split(jax.random.PRNGKey(2))
    N3, C3 = 64, 128
    x3 = jax.random.normal(k3x, (N3, C3), dtype=jnp.float32).astype(jnp.bfloat16)
    y3 = jax.random.randint(k3y, (N3, 1), 0, C3, dtype=jnp.int32)
    l4 = jax.block_until_ready(cross_entropy_loss(x3, y3))
    ref3 = _ref_ce(x3, y3)
    assert jnp.allclose(l4, ref3, atol=1e-3, rtol=1e-3), (l4, ref3)

    print("KERNEL_OK")
</pallas_src>

<mosaic_0001>
module attributes {stable_mosaic.version = 11 : i64} {
  func.func @_ce_partial_kernel(%arg0: i32, %arg1: memref<8x32xf32, #tpu.memory_space<vmem>>, %arg2: memref<8x1xi32, #tpu.memory_space<vmem>>, %arg3: memref<1x1xf32, #tpu.memory_space<smem>>) attributes {dimension_semantics = [#tpu.dimension_semantics<parallel>], iteration_bounds = array<i64: 1>, scalar_prefetch = 0 : i64, scratch_operands = 0 : i64, tpu.core_type = #tpu.core_type<tc>, window_params = [{transform_indices = @transform_0, window_bounds = array<i64: 8, 32>}, {transform_indices = @transform_1, window_bounds = array<i64: 8, 1>}, {transform_indices = @transform_2, window_bounds = array<i64: 1, 1>}]} {
    %c0 = arith.constant 0 : index
    %c0_0 = arith.constant 0 : index
    %0 = vector.load %arg1[%c0, %c0_0] : memref<8x32xf32, #tpu.memory_space<vmem>>, vector<8x32xf32>
    %c0_1 = arith.constant 0 : index
    %c0_2 = arith.constant 0 : index
    %1 = vector.load %arg2[%c0_1, %c0_2] : memref<8x1xi32, #tpu.memory_space<vmem>>, vector<8x1xi32>
    %2 = tpu.iota {dimensions = array<i32: 1>} : vector<1x32xi32>
    %3 = vector.broadcast %2 : vector<1x32xi32> to vector<8x32xi32>
    %4 = vector.broadcast %1 : vector<8x1xi32> to vector<8x32xi32>
    %5 = arith.cmpi eq, %3, %4 : vector<8x32xi32>
    %cst = arith.constant 0.000000e+00 : f32
    %6 = vector.broadcast %cst : f32 to vector<8x32xf32>
    %7 = arith.select %5, %0, %6 : vector<8x32xi1>, vector<8x32xf32>
    %cst_3 = arith.constant dense<0.000000e+00> : vector<8xf32>
    %8 = vector.multi_reduction <add>, %7, %cst_3 [1] : vector<8x32xf32> to vector<8xf32>
    %9 = vector.shape_cast %8 : vector<8xf32> to vector<8x1xf32>
    %cst_4 = arith.constant dense<0xFF800000> : vector<8xf32>
    %10 = vector.multi_reduction <maximumf>, %0, %cst_4 [1] : vector<8x32xf32> to vector<8xf32>
    %11 = vector.shape_cast %10 : vector<8xf32> to vector<8x1xf32>
    %12 = vector.broadcast %11 : vector<8x1xf32> to vector<8x32xf32>
    %13 = arith.subf %0, %12 : vector<8x32xf32>
    %14 = math.exp %13 : vector<8x32xf32>
    %cst_5 = arith.constant dense<0.000000e+00> : vector<8xf32>
    %15 = vector.multi_reduction <add>, %14, %cst_5 [1] : vector<8x32xf32> to vector<8xf32>
    %16 = vector.shape_cast %15 : vector<8xf32> to vector<8x1xf32>
    %17 = math.log %16 : vector<8x1xf32>
    %18 = arith.addf %11, %17 : vector<8x1xf32>
    %19 = arith.subf %18, %9 : vector<8x1xf32>
    %20 = vector.shape_cast %19 : vector<8x1xf32> to vector<1x8x1xf32>
    %cst_6 = arith.constant dense<0.000000e+00> : vector<1xf32>
    %21 = vector.multi_reduction <add>, %20, %cst_6 [1, 2] : vector<1x8x1xf32> to vector<1xf32>
    %22 = vector.shape_cast %21 : vector<1xf32> to vector<1x1x1xf32>
    %23 = vector.extract %22[0, 0, 0] : f32 from vector<1x1x1xf32>
    %c0_7 = arith.constant 0 : index
    %c0_8 = arith.constant 0 : index
    %24 = memref.load %arg3[%c0_7, %c0_8] : memref<1x1xf32, #tpu.memory_space<smem>>
    memref.store %23, %arg3[%c0_7, %c0_8] : memref<1x1xf32, #tpu.memory_space<smem>>
    return
  }
  func.func @transform_0(%arg0: i32) -> (i32, i32) {
    %c0_i32 = arith.constant 0 : i32
    %c0_i32_0 = arith.constant 0 : i32
    return %arg0, %c0_i32 : i32, i32
  }
  func.func @transform_1(%arg0: i32) -> (i32, i32) {
    %c0_i32 = arith.constant 0 : i32
    %c0_i32_0 = arith.constant 0 : i32
    return %arg0, %c0_i32 : i32, i32
  }
  func.func @transform_2(%arg0: i32) -> (i32, i32) {
    %c0_i32 = arith.constant 0 : i32
    %c0_i32_0 = arith.constant 0 : i32
    return %arg0, %c0_i32 : i32, i32
  }
}

</mosaic_0001>

<bundles_post_ra>
// kernel: tpu_custom_call.1
= control target key start
LH: loop header
LB: loop body
LE: loop exit
PB: predicated region body
PF: predicated region fallthrough
CT: control target
= control target key end

     0   :  { %vm21_vm0 = vcmask 261120   ;;  %s123_s0 = inlined_call_operand.vmem [shape: f32[8,32], index: 0, kind: input, shape index: {}]   ;;  %s124_s1 = inlined_call_operand.vmem [shape: s32[8,1], index: 1, kind: input, shape index: {}]   ;;  %s125_s2 = inlined_call_operand.hbm [shape: f32[1,1], index: 2, kind: output, shape index: {}]  }
   0x1   :  { %v12_v0 = vld [vmem:[%s123_s0] sm:$0xff] }
   0x2   :  { %7 = vsyncpa [#allocation3], 0  ;;  %v25_v1 = vsel %vm21_vm0, %v12_v0, -inf  ;;  %v85_v2 = vmov 0   ;;  %v13_v3 = vld [vmem:[%s124_s1] sm:$0xff]  ;;  %v14_v7 = vlaneseq  ;;  %vm38_vm2 = vcmask 7168  }
   0x3   :  { %68 = vset.pattern.permute.xlu0 %v85_v2  ;;  %s73_s14 = scalar_lea.hbm %s125_s2, 16 }
   0x4   :  { %26 = vmax.xlane.f32.xlu0 %v25_v1  ;;  %v15_v8 = vand.u32 127, %v14_v7  ;;  %p74_p0 = scmp.ne.s32.totalorder %s125_s2, %s73_s14  ;;  %p77_p1 = scmp.lt.u32.totalorder %s73_s14, %s125_s2 }
   0x6   :  { %p79_p2 = pnand %p77_p1, %p74_p0 }
  0x1a   :  { %17 = vperm.xlu0 %68, %v13_v3  }
  0x91   :  { %v27_v4 = vpop.xlane.xlu0 %26 }
  0x92   :  { %v28_v5 = vsub.f32 %v12_v0, %v27_v4 }
  0x94   :  { %v29_v6 = vmul.f32 1.442695, %v28_v5 }
  0x96   :  { %69 = vpow2.f32 %v29_v6 }
  0x99   :  { %v18_v9 = vpop.permute.xlu0 %17 }
  0x9a   :  { %vm19_vm1 = vcmp.eq.s32.totalorder %v15_v8, %v18_v9 }
  0x9b   :  { %v20_v11 = vsel %vm19_vm1, %v12_v0, 0.0 }
  0x9c   :  { %v22_v13 = vsel %vm21_vm0, %v20_v11, 0.0 }
  0xa0   :  { %v70_v10 = vpop.eup %69 }
  0xa1   :  { %v31_v12 = vsel %vm21_vm0, %v70_v10, 0.0 }
  0xa2   :  { %32 = vadd.xlane.f32.xlu1 %v31_v12 }
  0xa6   :  { %23 = vadd.xlane.f32.xlu1 %v22_v13 }
 0x12f   :  { %v33_v14 = vpop.xlane.xlu1 %32 }
 0x130   :  { %71 = vlog2.f32 %v33_v14 }
 0x133   :  { %v24_v17 = vpop.xlane.xlu1 %23 }
 0x13a   :  { %v72_v15 = vpop.eup %71 }
 0x13b   :  { %v35_v16 = vmul.f32 0.6931472, %v72_v15 }
 0x13d   :  { %v36_v18 = vadd.f32 %v35_v16, %v27_v4 }
 0x13f   :  { %v37_v19 = vsub.f32 %v36_v18, %v24_v17 }
 0x141   :  { %v39_v20 = vsel %vm38_vm2, %v37_v19, 0.0 }
 0x142   :  { %40 = vadd.xlane.f32.xlu1 %v39_v20 }
 0x1cf   :  { %v41_v21 = vpop.xlane.xlu1 %40 }
 0x1d0   :  { %v42_v22 = vrot.slane %v41_v21, 4 }
 0x1d2   :  { %v43_v23 = vadd.f32 %v42_v22, %v41_v21 }
 0x1d4   :  { %v44_v24 = vrot.slane %v43_v23, 2 }
 0x1d6   :  { %v45_v25 = vadd.f32 %v44_v24, %v43_v23 }
 0x1d8   :  { %v46_v26 = vrot.slane %v45_v25, 1 }
 0x1da   :  { %v47_v27 = vadd.f32 %v46_v26, %v45_v25 }
 0x1dc   :  { %64 = vpush %v47_v27 }
 0x20d   :  { %s65_s0 = spop %64 }
 0x20e   :  { %50 = sst [smem:[#allocation2]] %s65_s0 }
 0x20f   :  { %82 = shalt.err (!%p79_p2)
}
 0x210   :  { %s86_s19 = smov [#allocation2]  }
 0x211   :  { %58 = dma.smem_to_hbm %s86_s19, 16, %s125_s2, [#allocation3]  }
 0x212   :  { %83 = dma.done.wait [#allocation3], 16  }
 0x213   :  { %84 = vsyncadd [#allocation3], 4294967280 }
 0x214   :  { %62 = sfence }
 0x215   :  { %63 = vsyncpa [#allocation3], 1 }

</bundles_post_ra>
